<compile_context>
chip_gen: v6e
topology: v6e:2x2x1
jax: 0.10.0
libtpu: 0.0.40
codegen_flags: <defaults>
</compile_context>

<pallas_src>
import functools

import jax
import jax.numpy as jnp
from jax.experimental import pallas as pl
from jax.experimental.pallas import tpu as pltpu


def _round_up(x, m):
    return (x + m - 1) // m * m


def _default_vmem_limit():
    try:
        info = pltpu.get_tpu_info()
        cap = getattr(info, "vmem_capacity_bytes", 128 * 1024 * 1024)
    except Exception:  # e.g. interpret mode / CPU emulation
        cap = 128 * 1024 * 1024
    # Leave ~25% headroom for compiler scratch and kernel intermediates
    # (the (tm,H) f32 h tile, centered copy, normed). v5e/v6e -> 96 MiB, v7x -> 48 MiB.
    return int(min(96 * 1024 * 1024, (cap * 3) // 4))


def _bert_output_kernel(x_ref, w_ref, p_ref, res_ref, o_ref, *,
                        eps, inv_h, compute_dtype):
    # In-kernel cast of the activation tile to the MXU operand dtype (bf16 by
    # default). This is a VPU op fully hidden under MXU time; the tile is DMA'd
    # in its stored dtype so no extra HBM pass is added.
    x = x_ref[...].astype(compute_dtype)

    # dense: [tm, I] @ [I, H] -> [tm, H] on the MXU, f32 accumulation.
    h = jnp.dot(x, w_ref[...], preferred_element_type=jnp.float32)

    p = p_ref[...]                      # (3, H) slab: row 0 = bias, 1 = gamma, 2 = beta
    h = h + p[0:1, :]                   # bias, broadcast over rows
    # TODO(synk): dropout is identity at inference; training-mode masking omitted.
    h = h + res_ref[...].astype(jnp.float32)   # residual add

    # LayerNorm over the hidden (lane) dim. Two-pass variance for numerical
    # safety (avoids E[x^2]-E[x]^2 cancellation); the extra reduce is free
    # (XLU/VPU slots) under the GEMM.
    mean = jnp.sum(h, axis=-1, keepdims=True) * inv_h
    c = h - mean
    var = jnp.sum(c * c, axis=-1, keepdims=True) * inv_h
    normed = c * jax.lax.rsqrt(var + eps)

    o_ref[...] = (normed * p[1:2, :] + p[2:3, :]).astype(o_ref.dtype)


def bert_output(hidden_states, input_tensor, w, b, gamma, beta, *,
                eps=1e-12, row_tile=256, compute_dtype=jnp.bfloat16,
                act_buffers=2, vmem_limit_bytes=None):
    """Fused BertOutput forward.

    hidden_states: [N, I]  (output of the intermediate GEMM)
    input_tensor : [N, H]  (residual; aliased with the output)
    w: [I, H], b/gamma/beta: [H]

    row_tile: token tile size (multiples of 128/256; clamped for small N; ragged
              N is handled by a masked tail block, no padding copy).
    compute_dtype: MXU operand dtype (f32 accumulation). bf16 default — that is
              where the 197/918/996 TF/s peaks live on v5e/v6e/v7x. Use
              jnp.float32 only if bit-exact f32 GEMM is required.
    act_buffers: pipeline depth for the activation/residual tiles (use 3 on v6e
              to keep the MXU fed at the GEMM/DMA crossover).
    """
    N, I = hidden_states.shape
    H = input_tensor.shape[-1]
    assert w.shape == (I, H)
    out_dtype = input_tensor.dtype

    # Weight: cast once to the MXU operand dtype. In production, persist bf16
    # weights at init so this is not a per-call HBM rewrite.
    if w.dtype != compute_dtype:
        w = w.astype(compute_dtype)

    # Stack bias / gamma / beta into one resident (3, H) f32 slab (single DMA,
    # single VMEM allocation instead of three padded (1, H) tiles).
    params = jnp.stack([b.astype(jnp.float32),
                        gamma.astype(jnp.float32),
                        beta.astype(jnp.float32)], axis=0)

    # Row-tile sublane alignment: 16 for 16-bit operand layouts, 8 for 32-bit.
    itemsizes = (jnp.dtype(hidden_states.dtype).itemsize,
                 jnp.dtype(out_dtype).itemsize,
                 jnp.dtype(compute_dtype).itemsize)
    sub = 16 if min(itemsizes) == 2 else 8
    eff_tile = max(sub, min(_round_up(row_tile, sub), _round_up(N, sub)))

    # Ragged N: let Pallas mask the tail block (rows are independent, LN is
    # per-row, garbage tail rows are never written back). No jnp.pad copies.
    grid = (pl.cdiv(N, eff_tile),)

    if vmem_limit_bytes is None:
        vmem_limit_bytes = _default_vmem_limit()

    kernel = functools.partial(_bert_output_kernel, eps=float(eps),
                               inv_h=1.0 / H, compute_dtype=compute_dtype)

    bytes_accessed = (hidden_states.size * hidden_states.dtype.itemsize
                      + w.size * w.dtype.itemsize
                      + input_tensor.size * input_tensor.dtype.itemsize
                      + params.size * params.dtype.itemsize
                      + N * H * jnp.dtype(out_dtype).itemsize)
    cost = pl.CostEstimate(flops=2 * N * I * H + 10 * N * H,
                           transcendentals=N,
                           bytes_accessed=bytes_accessed)

    out = pl.pallas_call(
        kernel,
        out_shape=jax.ShapeDtypeStruct((N, H), out_dtype),
        grid_spec=pltpu.PrefetchScalarGridSpec(
            num_scalar_prefetch=0,
            grid=grid,
            in_specs=[
                # activation tile (streamed)
                pl.BlockSpec((eff_tile, I), lambda i: (i, 0),
                             pipeline_mode=pl.Buffered(act_buffers)),
                # dense weight: constant index_map -> single-buffer (halves VMEM)
                pl.BlockSpec((I, H), lambda i: (0, 0),
                             pipeline_mode=pl.Buffered(1)),
                # bias/gamma/beta slab: resident, single-buffer
                pl.BlockSpec((3, H), lambda i: (0, 0),
                             pipeline_mode=pl.Buffered(1)),
                # residual tile (streamed)
                pl.BlockSpec((eff_tile, H), lambda i: (i, 0),
                             pipeline_mode=pl.Buffered(act_buffers)),
            ],
            out_specs=pl.BlockSpec((eff_tile, H), lambda i: (i, 0)),
        ),
        compiler_params=pltpu.CompilerParams(
            dimension_semantics=("parallel",),
            vmem_limit_bytes=int(vmem_limit_bytes)),
        cost_estimate=cost,
        # residual has the same shape/dtype as the output and each tile is fully
        # read before its output tile is written -> safe to alias.
        input_output_aliases={3: 0},
    )(hidden_states, w, params, input_tensor)

    return out


def reference(hidden_states, input_tensor, w, b, gamma, beta, eps=1e-12):
    h = hidden_states.astype(jnp.float32) @ w.astype(jnp.float32) + b
    h = h + input_tensor.astype(jnp.float32)
    mean = jnp.mean(h, axis=-1, keepdims=True)
    var = jnp.mean((h - mean) ** 2, axis=-1, keepdims=True)
    return ((h - mean) * jax.lax.rsqrt(var + eps)) * gamma + beta


if __name__ == "__main__":
    # Small config: batch=2, seq=8, intermediate_size=64, hidden_size=32
    B, S, I, H = 2, 8, 64, 32
    key = jax.random.PRNGKey(0)
    k1, k2, k3, k4 = jax.random.split(key, 4)

    hidden_states = jax.random.normal(k1, (B, S, I), dtype=jnp.float32)
    input_tensor = jax.random.normal(k2, (B, S, H), dtype=jnp.float32)

    w = jax.random.normal(k3, (I, H), dtype=jnp.float32) * 0.02
    b = jax.random.normal(k4, (H,), dtype=jnp.float32) * 0.02
    gamma = jnp.ones((H,), dtype=jnp.float32)
    beta = jnp.zeros((H,), dtype=jnp.float32)

    x2d = hidden_states.reshape(B * S, I)
    r2d = input_tensor.reshape(B * S, H)

    ref = reference(x2d, r2d, w, b, gamma, beta)

    # f32 MXU-operand path (matches the PyTorch module up to accumulation order)
    out_f32 = jax.block_until_ready(
        bert_output(x2d, r2d, w, b, gamma, beta, compute_dtype=jnp.float32))
    assert out_f32.shape == (B * S, H)
    assert jnp.allclose(out_f32, ref, atol=1e-4, rtol=1e-4), "f32 mismatch vs reference"

    # Default bf16-operand MXU path (f32 accumulation) — production config
    out_bf16 = jax.block_until_ready(bert_output(x2d, r2d, w, b, gamma, beta))
    assert jnp.allclose(out_bf16, ref, atol=5e-2, rtol=5e-2), "bf16 mismatch vs reference"

    # Ragged / small odd token count: exercises the masked tail block (no padding).
    n_rag = 13
    out_rag = jax.block_until_ready(
        bert_output(x2d[:n_rag], r2d[:n_rag], w, b, gamma, beta))
    assert out_rag.shape == (n_rag, H)
    assert jnp.allclose(out_rag, ref[:n_rag], atol=5e-2, rtol=5e-2), \
        "ragged-N mismatch vs reference"

    print("KERNEL_OK")
</pallas_src>

<mosaic_0001>
module attributes {stable_mosaic.version = 11 : i64} {
  func.func @_bert_output_kernel(%arg0: i32, %arg1: memref<16x64xf32, #tpu.memory_space<vmem>>, %arg2: memref<64x32xf32, #tpu.memory_space<vmem>>, %arg3: memref<3x32xf32, #tpu.memory_space<vmem>>, %arg4: memref<16x32xf32, #tpu.memory_space<vmem>>, %arg5: memref<16x32xf32, #tpu.memory_space<vmem>>) attributes {dimension_semantics = [#tpu.dimension_semantics<parallel>], iteration_bounds = array<i64: 1>, scalar_prefetch = 0 : i64, scratch_operands = 0 : i64, tpu.core_type = #tpu.core_type<tc>, window_params = [{pipeline_mode = #tpu.pipeline_mode<double_buffered>, transform_indices = @transform_0, window_bounds = array<i64: 16, 64>}, {pipeline_mode = #tpu.pipeline_mode<synchronous>, transform_indices = @transform_1, window_bounds = array<i64: 64, 32>}, {pipeline_mode = #tpu.pipeline_mode<synchronous>, transform_indices = @transform_2, window_bounds = array<i64: 3, 32>}, {pipeline_mode = #tpu.pipeline_mode<double_buffered>, transform_indices = @transform_3, window_bounds = array<i64: 16, 32>}, {transform_indices = @transform_4, window_bounds = array<i64: 16, 32>}]} {
    %c0 = arith.constant 0 : index
    %c0_0 = arith.constant 0 : index
    %0 = vector.load %arg1[%c0, %c0_0] : memref<16x64xf32, #tpu.memory_space<vmem>>, vector<16x64xf32>
    %c0_1 = arith.constant 0 : index
    %c0_2 = arith.constant 0 : index
    %1 = vector.load %arg2[%c0_1, %c0_2] : memref<64x32xf32, #tpu.memory_space<vmem>>, vector<64x32xf32>
    %cst = arith.constant dense<0.000000e+00> : vector<16x32xf32>
    %2 = tpu.matmul %0, %1, %cst {dimension_numbers = #tpu.dot_dimension_numbers<[1], [0], [0], [1], [0, 0, 1, 1], [], []>} : vector<16x64xf32>, vector<64x32xf32>, vector<16x32xf32> -> vector<16x32xf32>
    %c0_3 = arith.constant 0 : index
    %c0_4 = arith.constant 0 : index
    %3 = vector.load %arg3[%c0_3, %c0_4] : memref<3x32xf32, #tpu.memory_space<vmem>>, vector<3x32xf32>
    %4 = vector.extract_strided_slice %3 {offsets = [0, 0], sizes = [1, 32], strides = [1, 1]} : vector<3x32xf32> to vector<1x32xf32>
    %5 = vector.broadcast %4 : vector<1x32xf32> to vector<16x32xf32>
    %6 = arith.addf %2, %5 : vector<16x32xf32>
    %c0_5 = arith.constant 0 : index
    %c0_6 = arith.constant 0 : index
    %7 = vector.load %arg4[%c0_5, %c0_6] : memref<16x32xf32, #tpu.memory_space<vmem>>, vector<16x32xf32>
    %8 = arith.addf %6, %7 : vector<16x32xf32>
    %cst_7 = arith.constant dense<0.000000e+00> : vector<16xf32>
    %9 = vector.multi_reduction <add>, %8, %cst_7 [1] : vector<16x32xf32> to vector<16xf32>
    %10 = vector.shape_cast %9 : vector<16xf32> to vector<16x1xf32>
    %cst_8 = arith.constant 3.125000e-02 : f32
    %11 = vector.broadcast %cst_8 : f32 to vector<16x1xf32>
    %12 = arith.mulf %10, %11 : vector<16x1xf32>
    %13 = vector.broadcast %12 : vector<16x1xf32> to vector<16x32xf32>
    %14 = arith.subf %8, %13 : vector<16x32xf32>
    %15 = arith.mulf %14, %14 : vector<16x32xf32>
    %cst_9 = arith.constant dense<0.000000e+00> : vector<16xf32>
    %16 = vector.multi_reduction <add>, %15, %cst_9 [1] : vector<16x32xf32> to vector<16xf32>
    %17 = vector.shape_cast %16 : vector<16xf32> to vector<16x1xf32>
    %cst_10 = arith.constant 3.125000e-02 : f32
    %18 = vector.broadcast %cst_10 : f32 to vector<16x1xf32>
    %19 = arith.mulf %17, %18 : vector<16x1xf32>
    %cst_11 = arith.constant 9.99999996E-13 : f32
    %20 = vector.broadcast %cst_11 : f32 to vector<16x1xf32>
    %21 = arith.addf %19, %20 : vector<16x1xf32>
    %22 = math.rsqrt %21 : vector<16x1xf32>
    %23 = vector.broadcast %22 : vector<16x1xf32> to vector<16x32xf32>
    %24 = arith.mulf %14, %23 : vector<16x32xf32>
    %25 = vector.extract_strided_slice %3 {offsets = [1, 0], sizes = [1, 32], strides = [1, 1]} : vector<3x32xf32> to vector<1x32xf32>
    %26 = vector.broadcast %25 : vector<1x32xf32> to vector<16x32xf32>
    %27 = arith.mulf %24, %26 : vector<16x32xf32>
    %28 = vector.extract_strided_slice %3 {offsets = [2, 0], sizes = [1, 32], strides = [1, 1]} : vector<3x32xf32> to vector<1x32xf32>
    %29 = vector.broadcast %28 : vector<1x32xf32> to vector<16x32xf32>
    %30 = arith.addf %27, %29 : vector<16x32xf32>
    %c0_12 = arith.constant 0 : index
    %c0_13 = arith.constant 0 : index
    %31 = vector.load %arg5[%c0_12, %c0_13] : memref<16x32xf32, #tpu.memory_space<vmem>>, vector<16x32xf32>
    tpu.vector_store %arg5[%c0_12, %c0_13], %30 {strides = array<i32>} : memref<16x32xf32, #tpu.memory_space<vmem>>, vector<16x32xf32>,
    return
  }
  func.func @transform_0(%arg0: i32) -> (i32, i32) {
    %c0_i32 = arith.constant 0 : i32
    %c0_i32_0 = arith.constant 0 : i32
    return %arg0, %c0_i32 : i32, i32
  }
  func.func @transform_1(%arg0: i32) -> (i32, i32) {
    %c0_i32 = arith.constant 0 : i32
    %c0_i32_0 = arith.constant 0 : i32
    %c0_i32_1 = arith.constant 0 : i32
    return %c0_i32, %c0_i32_0 : i32, i32
  }
  func.func @transform_2(%arg0: i32) -> (i32, i32) {
    %c0_i32 = arith.constant 0 : i32
    %c0_i32_0 = arith.constant 0 : i32
    %c0_i32_1 = arith.constant 0 : i32
    return %c0_i32, %c0_i32_0 : i32, i32
  }
  func.func @transform_3(%arg0: i32) -> (i32, i32) {
    %c0_i32 = arith.constant 0 : i32
    %c0_i32_0 = arith.constant 0 : i32
    return %arg0, %c0_i32 : i32, i32
  }
  func.func @transform_4(%arg0: i32) -> (i32, i32) {
    %c0_i32 = arith.constant 0 : i32
    %c0_i32_0 = arith.constant 0 : i32
    return %arg0, %c0_i32 : i32, i32
  }
}

</mosaic_0001>

<bundles_post_ra>
// kernel: tpu_custom_call.1
= control target key start
LH: loop header
LB: loop body
LE: loop exit
PB: predicated region body
PF: predicated region fallthrough
CT: control target
= control target key end

     0   :  { %9 = vsyncpa [#allocation3], 0  ;;  %s356_s0 = inlined_call_operand.vmem [shape: f32[16,64], index: 0, kind: input, shape index: {}]   ;;  %s357_s1 = inlined_call_operand.vmem [shape: f32[64,32], index: 1, kind: input, shape index: {}]   ;;  %s358_s2 = inlined_call_operand.vmem [shape: f32[3,32], index: 2, kind: input, shape index: {}]   ;;  %s359_s3 = inlined_call_operand.hbm [shape: f32[16,32], index: 3, kind: input, shape index: {}, may-alias: {3,4}]   ;;  %s360_s4 = inlined_call_operand.hbm [shape: f32[16,32], index: 4, kind: output, shape index: {}, may-alias: {3,4}]  }
   0x1   :  { %10 = vsyncpa [#allocation4], 0  ;;  %s274_s15 = smov [#allocation2]  }
   0x2   :  { %s22_s16 = sshll.u32 %s274_s15, 4  ;;  %s23_s16 = int_to_ptr.vmem [resolvable:$true] %s22_s16 }
   0x3   :  { %s238_s17 = scalar_lea.vmem %s23_s16, 256  ;;  %p243_p1 = scmp.lt.s32.totalorder %s23_s16, %s23_s16 }
   0x4   :  { %p239_p0 = scmp.ne.s32.totalorder %s23_s16, %s238_s17  ;;  %p244_p2 = scmp.lt.s32.totalorder %s238_s17, %s238_s17 }
   0x6   :  { %p245_p3 = por %p244_p2, %p243_p1 }
   0x8   :  { %p246_p4 = pnand %p245_p3, %p239_p0 }
   0xa   :  { %249 = shalt.err (!%p246_p4)
}
   0xb   :  { %s275_s18 = smov 128   ;;  %s276_s19 = smov 8  }
   0xc   :  { %28 = dma.hbm_to_vmem [thread:$0]  %s359_s3, 256, %s23_s16, [#allocation3], %s275_s18, %s275_s18, %s276_s19  }
   0xd   :  { %270 = dma.done.wait [#allocation3], 256  }
   0xe   :  { %271 = vsyncadd [#allocation3], 4294967040  ;;  %v41_v0 = vld [vmem:[%s357_s1 + $0x38] sm:$0xff]  ;;  %v40_v1 = vld [vmem:[%s357_s1 + $0x30] sm:$0xff]  ;;  %vm47_vm0 = vcmask 523264   ;;  %v43_v10 = vlaneseq  ;;  %vm133_vm1 = vcmask 261120  }
   0xf   :  { %203 = vmatprep.subr.mxu0 %v41_v0  ;;  %v39_v2 = vld [vmem:[%s357_s1 + $0x28] sm:$0xff]  ;;  %v32_v3 = vld [vmem:[%s356_s0] sm:$0xff]  ;;  %v37_v5 = vld [vmem:[%s357_s1 + $0x18] sm:$0xff] }
  0x10   :  { %204 = vmatpush3.msra.mxu0 %v41_v0  ;;  %219 = vmatprep.mubr.msk.f32.mxu0 %vm47_vm0, %v32_v3  ;;  %v38_v4 = vld [vmem:[%s357_s1 + $0x20] sm:$0xff]  ;;  %v36_v6 = vld [vmem:[%s357_s1 + $0x10] sm:$0xff]  ;;  %v35_v7 = vld [vmem:[%s357_s1 + $0x8] sm:$0xff]  ;;  %v44_v11 = vshrl.u32 %v43_v10, 7 }
  0x11   :  { %205 = vmatprep.subr.mxu0 %v40_v1  ;;  %v34_v8 = vld [vmem:[%s357_s1] sm:$0xff]  ;;  %v33_v9 = vld [vmem:[%s356_s0 + $0x8] sm:$0xff]  ;;  %s277_s0 = smov [#allocation5]  }
  0x12   :  { %206 = vmatpush3.msra.mxu0 %v40_v1  ;;  %v45_v12 = vsub.s32 0, %v44_v11  ;;  %v42_v13 = vld [vmem:[%s358_s2] sm:$0x7]  ;;  %v130_v20 = vld [vmem:[#allocation2 + $0x8] sm:$0xff]  ;;  %v162_v41 = vsub.s32 1, %v44_v11  ;;  %v168_v42 = vsub.s32 2, %v44_v11 }
  0x13   :  { %207 = vmatprep.subr.mxu0 %v39_v2  ;;  %v129_v17 = vld [vmem:[#allocation2] sm:$0xff]  ;;  %s179_s1 = sshll.u32 %s277_s0, 4  ;;  %s180_s1 = int_to_ptr.vmem [resolvable:$true] %s179_s1 }
  0x14   :  { %208 = vmatpush3.msra.mxu0 %v39_v2  ;;  %v46_v14 = vrot.slane %v42_v13, %v45_v12  ;;  %v163_v43 = vrot.slane %v42_v13, %v162_v41  ;;  %v169_v45 = vrot.slane %v42_v13, %v168_v42  ;;  %s250_s2 = scalar_lea.vmem %s180_s1, 256  ;;  %p255_p6 = scmp.lt.s32.totalorder %s180_s1, %s180_s1 }
  0x15   :  { %209 = vmatprep.subr.mxu0 %v38_v4  ;;  %p251_p5 = scmp.ne.s32.totalorder %s180_s1, %s250_s2  ;;  %p256_p7 = scmp.lt.s32.totalorder %s250_s2, %s250_s2 }
  0x16   :  { %210 = vmatpush3.msra.mxu0 %v38_v4 }
  0x17   :  { %211 = vmatprep.subr.mxu0 %v37_v5  ;;  %p257_p8 = por %p256_p7, %p255_p6 }
  0x18   :  { %212 = vmatpush3.msra.mxu0 %v37_v5 }
  0x19   :  { %213 = vmatprep.subr.mxu0 %v36_v6  ;;  %p258_p9 = pnand %p257_p8, %p251_p5 }
  0x1a   :  { %214 = vmatpush3.msra.mxu0 %v36_v6 }
  0x1b   :  { %215 = vmatprep.subr.mxu0 %v35_v7 }
  0x1c   :  { %216 = vmatpush3.msra.mxu0 %v35_v7 }
  0x1d   :  { %217 = vmatprep.subr.mxu0 %v34_v8 }
  0x1e   :  { %218 = vmatpush3.msra.mxu0 %v34_v8 }
  0x1f   :  { %220 = vmatmul.mubr.msk.f32.vlgmr.msra.gmra.mxu0 %vm47_vm0, %v33_v9 }
  0xdf   :  { %v221_v15 = vpop.f32.mrf.mxu0 }
  0xe0   :  { %v126_v18 = vadd.f32 %v221_v15, %v46_v14 }
  0xe1   :  { %v120_v16 = vpop.f32.mrf.mxu0 }
  0xe2   :  { %v121_v19 = vadd.f32 %v120_v16, %v46_v14  ;;  %v132_v23 = vadd.f32 %v130_v20, %v126_v18 }
  0xe4   :  { %v131_v21 = vadd.f32 %v129_v17, %v121_v19  ;;  %v137_v24 = vsel %vm133_vm1, %v132_v23, 0.0 }
  0xe6   :  { %v134_v22 = vsel %vm133_vm1, %v131_v21, 0.0 }
  0xe7   :  { %135 = vadd.xlane.f32.xlu0 %v134_v22 }
  0xeb   :  { %138 = vadd.xlane.f32.xlu0 %v137_v24 }
 0x170   :  { %v136_v25 = vpop.xlane.xlu0 %135 }
 0x171   :  { %v140_v26 = vmul.f32 0.03125, %v136_v25 }
 0x173   :  { %v142_v27 = vsub.f32 %v131_v21, %v140_v26 }
 0x174   :  { %v139_v28 = vpop.xlane.xlu0 %138 }
 0x175   :  { %v141_v29 = vmul.f32 0.03125, %v139_v28  ;;  %v144_v30 = vmul.f32 %v142_v27, %v142_v27 }
 0x177   :  { %v143_v31 = vsub.f32 %v132_v23, %v141_v29  ;;  %v146_v32 = vsel %vm133_vm1, %v144_v30, 0.0 }
 0x178   :  { %147 = vadd.xlane.f32.xlu1 %v146_v32 }
 0x179   :  { %v145_v33 = vmul.f32 %v143_v31, %v143_v31 }
 0x17b   :  { %v149_v34 = vsel %vm133_vm1, %v145_v33, 0.0 }
 0x17c   :  { %150 = vadd.xlane.f32.xlu1 %v149_v34 }
 0x201   :  { %v148_v35 = vpop.xlane.xlu1 %147 }
 0x202   :  { %v152_v36 = vmul.f32 0.03125, %v148_v35 }
 0x204   :  { %v154_v37 = vadd.f32 1e-12, %v152_v36 }
 0x205   :  { %v151_v38 = vpop.xlane.xlu1 %150 }
 0x206   :  { %226 = vrsqrt.f32 %v154_v37  ;;  %v153_v39 = vmul.f32 0.03125, %v151_v38 }
 0x208   :  { %v155_v40 = vadd.f32 1e-12, %v153_v39 }
 0x20a   :  { %228 = vrsqrt.f32 %v155_v40 }
 0x213   :  { %v227_v44 = vpop.eup %226 }
 0x214   :  { %v158_v46 = vmul.f32 %v227_v44, %v142_v27 }
 0x216   :  { %v164_v47 = vmul.f32 %v163_v43, %v158_v46 }
 0x217   :  { %v229_v48 = vpop.eup %228 }
 0x218   :  { %v159_v49 = vmul.f32 %v229_v48, %v143_v31  ;;  %v170_v50 = vadd.f32 %v169_v45, %v164_v47 }
 0x21a   :  { %v165_v51 = vmul.f32 %v163_v43, %v159_v49  ;;  %172 = vst.msk [vmem:[#allocation5] sm:$0xff] %vm133_vm1, %v170_v50 }
 0x21c   :  { %v171_v52 = vadd.f32 %v169_v45, %v165_v51 }
 0x21e   :  { %173 = vst.msk [vmem:[#allocation5 + $0x8] sm:$0xff] %vm133_vm1, %v171_v52 }
 0x21f   :  { %261 = shalt.err (!%p258_p9)
}
 0x220   :  { %185 = dma.vmem_to_hbm [thread:$0]  %s180_s1, 256, %s360_s4, [#allocation4], %s275_s18, %s275_s18, %s276_s19  }
 0x221   :  { %272 = dma.done.wait [#allocation4], 256  }
 0x222   :  { %273 = vsyncadd [#allocation4], 4294967040 }
 0x223   :  { %189 = vsyncpa [#allocation3], 1 }
 0x224   :  { %190 = vsyncpa [#allocation4], 1 }

</bundles_post_ra>
